<compile_context>
chip_gen: v5e
topology: v5e:2x2
jax: 0.10.0
libtpu: 0.0.40
codegen_flags: <defaults>
</compile_context>

<pallas_src>
import jax
import jax.numpy as jnp
from jax.experimental import pallas as pl
from jax.experimental.pallas import tpu as pltpu


def dyemb_kernel(ids_ref, len_ref, tab_ref, out_ref):
    F, B, L = ids_ref.shape
    FV, Npad = tab_ref.shape
    V = FV // F

    # Loop-invariant iotas hoisted out of the (unrolled) field loop.
    pos = jax.lax.broadcasted_iota(jnp.int32, (B, L), 1)            # position in seq
    vocab = jax.lax.broadcasted_iota(jnp.int32, (B, L, FV), 2)      # global vocab id

    # weighted[b, f*V + v] = (# valid occurrences of id v in field f, row b) / max(len, 1)
    weighted = jnp.zeros((B, FV), dtype=jnp.float32)
    for f in range(F):                       # F is tiny & static -> unrolled at trace time
        ids_f = ids_ref[f]                   # (B, L) int32
        len_f = len_ref[f]                   # (B, 1) int32
        # clamp-to-1 (matches the PyTorch code) then approx reciprocal on the EUP.
        recip_f = pl.reciprocal(jnp.maximum(len_f, 1).astype(jnp.float32),
                                approx=True)                         # (B, 1)
        # Fold the length mask into the ids: masked slots become -1 and can never
        # match the (non-negative) vocab iota -> no separate mask multiply needed.
        gids = jnp.where(pos < len_f, ids_f + f * V, -1)             # (B, L)
        hits = gids[:, :, None] == vocab                             # (B, L, FV) bool
        # Weighted one-hot: each valid hit contributes 1/len directly, fusing the
        # mask and the mean-normalization into the count build.
        weighted = weighted + jnp.sum(
            jnp.where(hits, recip_f[:, :, None], 0.0), axis=1)       # (B, FV)

    # Single MXU pass over the block-diagonal packed table:
    # (B, F*V) @ (F*V, Npad) -> (B, Npad), already normalized, lane-dense store.
    out_ref[...] = jnp.dot(weighted, tab_ref[...],
                           preferred_element_type=jnp.float32)


def dyemb_forward(ids_fbl, lengths_fb, tables_fve):
    """ids_fbl: (F,B,L) int32, lengths_fb: (F,B) int32, tables_fve: (F,V,E) f32.

    Returns (B, F, E) float32 (Batch x Field x Embedding), matching DyEmb.forward.
    """
    F, B, L = ids_fbl.shape
    _, V, E = tables_fve.shape
    FE = F * E
    Npad = max(128, ((FE + 127) // 128) * 128)   # lane-dense output / full MXU tile width

    # Block-diagonal packed table: field f occupies rows [f*V, (f+1)*V) and
    # cols [f*E, (f+1)*E); remaining columns are zero (keeps padded output cols 0).
    bd = jnp.zeros((F * V, Npad), dtype=jnp.float32)
    for f in range(F):
        bd = bd.at[f * V:(f + 1) * V, f * E:(f + 1) * E].set(tables_fve[f])

    out = pl.pallas_call(
        dyemb_kernel,
        out_shape=jax.ShapeDtypeStruct((B, Npad), jnp.float32),
        in_specs=[
            pl.BlockSpec(memory_space=pltpu.MemorySpace.VMEM),   # ids    (F, B, L)
            pl.BlockSpec(memory_space=pltpu.MemorySpace.VMEM),   # lens   (F, B, 1)
            pl.BlockSpec(memory_space=pltpu.MemorySpace.VMEM),   # table  (F*V, Npad)
        ],
        out_specs=pl.BlockSpec(memory_space=pltpu.MemorySpace.VMEM),
    )(ids_fbl, lengths_fb.reshape(F, B, 1), bd)

    # Output is already batch-major; just drop the lane padding and split fields.
    return out[:, :FE].reshape(B, F, E)


def dyemb_reference(ids_fbl, lengths_fb, tables_fve):
    """Pure-JAX reference matching the PyTorch forward (exact divide)."""
    F, B, L = ids_fbl.shape
    outs = []
    for f in range(F):
        emb = tables_fve[f][ids_fbl[f]]                              # (B, L, E)
        mask = (jnp.arange(L)[None, :] < lengths_fb[f][:, None]).astype(jnp.float32)
        summed = (emb * mask[:, :, None]).sum(axis=1)                # (B, E)
        denom = jnp.maximum(lengths_fb[f], 1).astype(jnp.float32)
        outs.append(summed / denom[:, None])
    return jnp.stack(outs, axis=1)                                   # (B, F, E)


if __name__ == "__main__":
    # Module configuration (deterministic, synthetic).
    fnames = ["f0", "f1", "f2"]
    max_idxs = {"f0": 10, "f1": 7, "f2": 15}     # nn.Embedding(max_idx + 1, E)
    embedding_size = 4
    B, L = 8, 8                                  # Batch_size, Max_feature_size
    F = len(fnames)
    vocab_sizes = [max_idxs[k] + 1 for k in fnames]
    V = max(vocab_sizes)                         # padded common vocab size

    key = jax.random.PRNGKey(0)
    k_tab, k_ids, k_len = jax.random.split(key, 3)

    # Per-field embedding tables (nn.Embedding default init ~ N(0, 1)),
    # zero-padded to a common vocab size and stacked.
    tables = []
    for i, vs in enumerate(vocab_sizes):
        t = jax.random.normal(jax.random.fold_in(k_tab, i), (vs, embedding_size),
                              dtype=jnp.float32)
        tables.append(jnp.pad(t, ((0, V - vs), (0, 0))))
    tables_fve = jnp.stack(tables)                                   # (F, V, E)

    # Dynamic ids per field (valid in each field's own vocab).
    ids = []
    for i, vs in enumerate(vocab_sizes):
        ids.append(jax.random.randint(jax.random.fold_in(k_ids, i), (B, L), 0, vs,
                                      dtype=jnp.int32))
    ids_fbl = jnp.stack(ids)                                         # (F, B, L)

    # Lengths in [0, L]; zeros exercise the clamp-to-1 path.
    lengths_fb = jax.random.randint(k_len, (F, B), 0, L + 1, dtype=jnp.int32)

    out = dyemb_forward(ids_fbl, lengths_fb, tables_fve)
    jax.block_until_ready(out)

    ref = dyemb_reference(ids_fbl, lengths_fb, tables_fve)
    assert out.shape == (B, F, embedding_size), out.shape
    # Tolerance is loosened slightly because the kernel uses the EUP approximate
    # reciprocal for 1/len (<= ~1e-3 relative); structural errors would be O(1).
    assert jnp.allclose(out, ref, atol=2e-2, rtol=2e-2), "mismatch vs reference"
    print("KERNEL_OK")
</pallas_src>

<mosaic_0001>
module attributes {stable_mosaic.version = 11 : i64} {
  func.func @dyemb_kernel(%arg0: memref<3x8x8xi32, #tpu.memory_space<vmem>>, %arg1: memref<3x8x1xi32, #tpu.memory_space<vmem>>, %arg2: memref<48x128xf32, #tpu.memory_space<vmem>>, %arg3: memref<8x128xf32, #tpu.memory_space<vmem>>) attributes {dimension_semantics = [], scalar_prefetch = 0 : i64, scratch_operands = 0 : i64, tpu.core_type = #tpu.core_type<tc>} {
    %0 = tpu.iota {dimensions = array<i32: 1>} : vector<8x8xi32>
    %1 = tpu.iota {dimensions = array<i32: 2>} : vector<8x8x48xi32>
    %cst = arith.constant 0.000000e+00 : f32
    %2 = vector.broadcast %cst : f32 to vector<8x48xf32>
    %c0 = arith.constant 0 : index
    %c0_0 = arith.constant 0 : index
    %c0_1 = arith.constant 0 : index
    %3 = vector.load %arg0[%c0, %c0_0, %c0_1] : memref<3x8x8xi32, #tpu.memory_space<vmem>>, vector<1x8x8xi32>
    %4 = vector.shape_cast %3 : vector<1x8x8xi32> to vector<8x8xi32>
    %c0_2 = arith.constant 0 : index
    %c0_3 = arith.constant 0 : index
    %c0_4 = arith.constant 0 : index
    %5 = vector.load %arg1[%c0_2, %c0_3, %c0_4] : memref<3x8x1xi32, #tpu.memory_space<vmem>>, vector<1x8x1xi32>
    %6 = vector.shape_cast %5 : vector<1x8x1xi32> to vector<8x1xi32>
    %c1_i32 = arith.constant 1 : i32
    %7 = vector.broadcast %c1_i32 : i32 to vector<8x1xi32>
    %8 = arith.maxsi %6, %7 : vector<8x1xi32>
    %9 = arith.sitofp %8 : vector<8x1xi32> to vector<8x1xf32>
    %10 = tpu.reciprocal %9 {approx = true} : vector<8x1xf32> -> vector<8x1xf32>
    %11 = vector.broadcast %6 : vector<8x1xi32> to vector<8x8xi32>
    %12 = arith.cmpi slt, %0, %11 : vector<8x8xi32>
    %c0_i32 = arith.constant 0 : i32
    %13 = vector.broadcast %c0_i32 : i32 to vector<8x8xi32>
    %14 = arith.addi %4, %13 : vector<8x8xi32>
    %c-1_i32 = arith.constant -1 : i32
    %15 = vector.broadcast %c-1_i32 : i32 to vector<8x8xi32>
    %16 = arith.select %12, %14, %15 : vector<8x8xi1>, vector<8x8xi32>
    %17 = vector.shape_cast %16 : vector<8x8xi32> to vector<8x8x1xi32>
    %18 = vector.broadcast %17 : vector<8x8x1xi32> to vector<8x8x48xi32>
    %19 = arith.cmpi eq, %18, %1 : vector<8x8x48xi32>
    %20 = vector.shape_cast %10 : vector<8x1xf32> to vector<8x1x1xf32>
    %cst_5 = arith.constant 0.000000e+00 : f32
    %21 = vector.shape_cast %20 : vector<8x1x1xf32> to vector<8x1x1xf32>
    %22 = vector.broadcast %21 : vector<8x1x1xf32> to vector<8x8x48xf32>
    %23 = vector.broadcast %cst_5 : f32 to vector<8x8x48xf32>
    %24 = arith.select %19, %22, %23 : vector<8x8x48xi1>, vector<8x8x48xf32>
    %cst_6 = arith.constant dense<0.000000e+00> : vector<8x48xf32>
    %25 = vector.multi_reduction <add>, %24, %cst_6 [1] : vector<8x8x48xf32> to vector<8x48xf32>
    %26 = arith.addf %2, %25 : vector<8x48xf32>
    %c1 = arith.constant 1 : index
    %c0_7 = arith.constant 0 : index
    %c0_8 = arith.constant 0 : index
    %27 = vector.load %arg0[%c1, %c0_7, %c0_8] : memref<3x8x8xi32, #tpu.memory_space<vmem>>, vector<1x8x8xi32>
    %28 = vector.shape_cast %27 : vector<1x8x8xi32> to vector<8x8xi32>
    %c1_9 = arith.constant 1 : index
    %c0_10 = arith.constant 0 : index
    %c0_11 = arith.constant 0 : index
    %29 = vector.load %arg1[%c1_9, %c0_10, %c0_11] : memref<3x8x1xi32, #tpu.memory_space<vmem>>, vector<1x8x1xi32>
    %30 = vector.shape_cast %29 : vector<1x8x1xi32> to vector<8x1xi32>
    %c1_i32_12 = arith.constant 1 : i32
    %31 = vector.broadcast %c1_i32_12 : i32 to vector<8x1xi32>
    %32 = arith.maxsi %30, %31 : vector<8x1xi32>
    %33 = arith.sitofp %32 : vector<8x1xi32> to vector<8x1xf32>
    %34 = tpu.reciprocal %33 {approx = true} : vector<8x1xf32> -> vector<8x1xf32>
    %35 = vector.broadcast %30 : vector<8x1xi32> to vector<8x8xi32>
    %36 = arith.cmpi slt, %0, %35 : vector<8x8xi32>
    %c16_i32 = arith.constant 16 : i32
    %37 = vector.broadcast %c16_i32 : i32 to vector<8x8xi32>
    %38 = arith.addi %28, %37 : vector<8x8xi32>
    %c-1_i32_13 = arith.constant -1 : i32
    %39 = vector.broadcast %c-1_i32_13 : i32 to vector<8x8xi32>
    %40 = arith.select %36, %38, %39 : vector<8x8xi1>, vector<8x8xi32>
    %41 = vector.shape_cast %40 : vector<8x8xi32> to vector<8x8x1xi32>
    %42 = vector.broadcast %41 : vector<8x8x1xi32> to vector<8x8x48xi32>
    %43 = arith.cmpi eq, %42, %1 : vector<8x8x48xi32>
    %44 = vector.shape_cast %34 : vector<8x1xf32> to vector<8x1x1xf32>
    %cst_14 = arith.constant 0.000000e+00 : f32
    %45 = vector.shape_cast %44 : vector<8x1x1xf32> to vector<8x1x1xf32>
    %46 = vector.broadcast %45 : vector<8x1x1xf32> to vector<8x8x48xf32>
    %47 = vector.broadcast %cst_14 : f32 to vector<8x8x48xf32>
    %48 = arith.select %43, %46, %47 : vector<8x8x48xi1>, vector<8x8x48xf32>
    %cst_15 = arith.constant dense<0.000000e+00> : vector<8x48xf32>
    %49 = vector.multi_reduction <add>, %48, %cst_15 [1] : vector<8x8x48xf32> to vector<8x48xf32>
    %50 = arith.addf %26, %49 : vector<8x48xf32>
    %c2 = arith.constant 2 : index
    %c0_16 = arith.constant 0 : index
    %c0_17 = arith.constant 0 : index
    %51 = vector.load %arg0[%c2, %c0_16, %c0_17] : memref<3x8x8xi32, #tpu.memory_space<vmem>>, vector<1x8x8xi32>
    %52 = vector.shape_cast %51 : vector<1x8x8xi32> to vector<8x8xi32>
    %c2_18 = arith.constant 2 : index
    %c0_19 = arith.constant 0 : index
    %c0_20 = arith.constant 0 : index
    %53 = vector.load %arg1[%c2_18, %c0_19, %c0_20] : memref<3x8x1xi32, #tpu.memory_space<vmem>>, vector<1x8x1xi32>
    %54 = vector.shape_cast %53 : vector<1x8x1xi32> to vector<8x1xi32>
    %c1_i32_21 = arith.constant 1 : i32
    %55 = vector.broadcast %c1_i32_21 : i32 to vector<8x1xi32>
    %56 = arith.maxsi %54, %55 : vector<8x1xi32>
    %57 = arith.sitofp %56 : vector<8x1xi32> to vector<8x1xf32>
    %58 = tpu.reciprocal %57 {approx = true} : vector<8x1xf32> -> vector<8x1xf32>
    %59 = vector.broadcast %54 : vector<8x1xi32> to vector<8x8xi32>
    %60 = arith.cmpi slt, %0, %59 : vector<8x8xi32>
    %c32_i32 = arith.constant 32 : i32
    %61 = vector.broadcast %c32_i32 : i32 to vector<8x8xi32>
    %62 = arith.addi %52, %61 : vector<8x8xi32>
    %c-1_i32_22 = arith.constant -1 : i32
    %63 = vector.broadcast %c-1_i32_22 : i32 to vector<8x8xi32>
    %64 = arith.select %60, %62, %63 : vector<8x8xi1>, vector<8x8xi32>
    %65 = vector.shape_cast %64 : vector<8x8xi32> to vector<8x8x1xi32>
    %66 = vector.broadcast %65 : vector<8x8x1xi32> to vector<8x8x48xi32>
    %67 = arith.cmpi eq, %66, %1 : vector<8x8x48xi32>
    %68 = vector.shape_cast %58 : vector<8x1xf32> to vector<8x1x1xf32>
    %cst_23 = arith.constant 0.000000e+00 : f32
    %69 = vector.shape_cast %68 : vector<8x1x1xf32> to vector<8x1x1xf32>
    %70 = vector.broadcast %69 : vector<8x1x1xf32> to vector<8x8x48xf32>
    %71 = vector.broadcast %cst_23 : f32 to vector<8x8x48xf32>
    %72 = arith.select %67, %70, %71 : vector<8x8x48xi1>, vector<8x8x48xf32>
    %cst_24 = arith.constant dense<0.000000e+00> : vector<8x48xf32>
    %73 = vector.multi_reduction <add>, %72, %cst_24 [1] : vector<8x8x48xf32> to vector<8x48xf32>
    %74 = arith.addf %50, %73 : vector<8x48xf32>
    %c0_25 = arith.constant 0 : index
    %c0_26 = arith.constant 0 : index
    %75 = vector.load %arg2[%c0_25, %c0_26] : memref<48x128xf32, #tpu.memory_space<vmem>>, vector<48x128xf32>
    %cst_27 = arith.constant dense<0.000000e+00> : vector<8x128xf32>
    %76 = tpu.matmul %74, %75, %cst_27 {dimension_numbers = #tpu.dot_dimension_numbers<[1], [0], [0], [1], [0, 0, 1, 1], [], []>} : vector<8x48xf32>, vector<48x128xf32>, vector<8x128xf32> -> vector<8x128xf32>
    %c0_28 = arith.constant 0 : index
    %c0_29 = arith.constant 0 : index
    %77 = vector.load %arg3[%c0_28, %c0_29] : memref<8x128xf32, #tpu.memory_space<vmem>>, vector<8x128xf32>
    tpu.vector_store %arg3[%c0_28, %c0_29], %76 {strides = array<i32>} : memref<8x128xf32, #tpu.memory_space<vmem>>, vector<8x128xf32>,
    return
  }
}

</mosaic_0001>

<bundles_post_ra>
// kernel: tpu_custom_call.1
= control target key start
LH: loop header
LB: loop body
LE: loop exit
PB: predicated region body
PF: predicated region fallthrough
CT: control target
= control target key end

     0   :  { %8 = vsyncpa [#allocation3], 0  ;;  %s1021_s0 = inlined_call_operand.vmem [shape: s32[3,8,8], index: 0, kind: input, shape index: {}]   ;;  %s1022_s1 = inlined_call_operand.vmem [shape: s32[3,8,1], index: 1, kind: input, shape index: {}]   ;;  %s1023_s2 = inlined_call_operand.hbm [shape: f32[48,128], index: 2, kind: input, shape index: {}]   ;;  %s1024_s3 = inlined_call_operand.hbm [shape: f32[8,128], index: 3, kind: output, shape index: {}]  }
   0x1   :  { %9 = vsyncpa [#allocation4], 0  ;;  %s18_s14 = sshll.u32 %s1023_s2, 4  ;;  %s771_s15 = smov [#allocation2]   ;;  %s19_s14 = int_to_ptr.hbm [resolvable:$true] %s18_s14 }
   0x2   :  { %s20_s16 = sshll.u32 %s771_s15, 4  ;;  %s772_s17 = smov 128   ;;  %s21_s16 = int_to_ptr.vmem [resolvable:$true] %s20_s16 }
   0x3   :  { %s773_s18 = smov 8  }
   0x4   :  { %26 = dma.hbm_to_vmem [thread:$0]  %s19_s14, 768, %s21_s16, [#allocation3], %s772_s17, %s772_s17, %s773_s18  }
   0x5   :  { %767 = dma.done.wait [#allocation3], 768  }
   0x6   :  { %768 = vsyncadd [#allocation3], 4294966528  ;;  %v774_v0 = vmov 0   ;;  %v34_v1 = vld [vmem:[%s1022_s1] sm:$0xff]  ;;  %v694_v2 = vld [vmem:[%s1022_s1 + $0x8] sm:$0xff]  ;;  %v31_v46 = vlaneseq  ;;  %vm164_vm8 = vcmask 392192  }
   0x7   :  { %703 = vset.pattern.permute.xlu0 %v774_v0  ;;  %704 = vset.pattern.permute.xlu1 %v774_v0  ;;  %v696_v3 = vld [vmem:[%s1022_s1 + $0x10] sm:$0xff]  ;;  %vm35_vm0 = vcmp.gt.s32.totalorder %v34_v1, 1  ;;  %vm233_vm1 = vcmp.gt.s32.totalorder %v694_v2, 1  ;;  %v33_v49 = vld [vmem:[%s1021_s0] sm:$0xff]  ;;  %v693_v55 = vld [vmem:[%s1021_s0 + $0x8] sm:$0xff]  ;;  %s683_s5 = sshll.u32 %s1024_s3, 4  ;;  %s684_s5 = int_to_ptr.hbm [resolvable:$true] %s683_s5 }
   0x8   :  { %705 = vset.pattern.permute.xlu2 %v774_v0  ;;  %40 = vperm.xlu0 %703, %v34_v1   ;;  %v36_v4 = vsel %vm35_vm0, %v34_v1, 1  ;;  %v234_v13 = vsel %vm233_vm1, %v694_v2, 1  ;;  %vm431_vm2 = vcmp.gt.s32.totalorder %v696_v3, 1  ;;  %v825_v47 = vshrl.u32 %v31_v46, 7 }
   0x9   :  { %238 = vperm.xlu1 %704, %v694_v2   ;;  %436 = vperm.xlu2 %705, %v696_v3   ;;  %v37_v5 = vcvt.s32.f32 %v36_v4  ;;  %v235_v17 = vcvt.s32.f32 %v234_v13  ;;  %v432_v25 = vsel %vm431_vm2, %v696_v3, 1  ;;  %v830_v48 = vand.u32 127, %v31_v46  ;;  %v695_v3 = vld [vmem:[%s1021_s0 + $0x10] sm:$0xff]  ;;  %s775_s0 = smov [#allocation5]  }
   0xa   :  { %v433_v28 = vcvt.s32.f32 %v432_v25  ;;  %v241_v57 = vadd.s32 16, %v693_v55  ;;  %v439_v4 = vadd.s32 32, %v695_v3  ;;  %s681_s29 = sshll.u32 %s775_s0, 4  ;;  %s682_s29 = int_to_ptr.vmem [resolvable:$true] %s681_s29 }
   0xb   :  { %713 = vrcp.f32 %v37_v5 }
   0xc   :  { %715 = vrcp.f32 %v235_v17 }
   0xd   :  { %717 = vrcp.f32 %v433_v28 }
  0x11   :  { %v714_v6 = vpop.eup %713 }
  0x12   :  { %v116_v7 = vperm.slane %v714_v6, 0  ;;  %v110_v8 = vrot.slane %v714_v6, 2  ;;  %v109_v9 = vrot.slane %v714_v6, 1  ;;  %v111_v12 = vrot.slane %v714_v6, 3  ;;  %v811_v24 = vpop.eup %715 }
  0x13   :  { %v113_v14 = vrot.slane %v714_v6, 5  ;;  %v112_v15 = vrot.slane %v714_v6, 4  ;;  %v114_v20 = vrot.slane %v714_v6, 6  ;;  %v115_v21 = vrot.slane %v714_v6, 7  ;;  %v817_v34 = vpop.eup %717 }
  0x14   :  { %125 = vperm.xlu1 %704, %v116_v7   ;;  %v118_v10 = vperm.slane %v110_v8, 0  ;;  %v117_v11 = vperm.slane %v109_v9, 0  ;;  %v119_v16 = vperm.slane %v111_v12, 0  ;;  %v308_v26 = vrot.slane %v811_v24, 1 }
  0x15   :  { %v121_v18 = vperm.slane %v113_v14, 0  ;;  %v120_v19 = vperm.slane %v112_v15, 0  ;;  %v122_v22 = vperm.slane %v114_v20, 0  ;;  %v123_v23 = vperm.slane %v115_v21, 0 }
  0x16   :  { %133 = vperm.xlu0 %703, %v118_v10   ;;  %129 = vperm.xlu2 %705, %v117_v11   ;;  %v315_v27 = vperm.slane %v811_v24, 0  ;;  %v316_v29 = vperm.slane %v308_v26, 0  ;;  %v309_v30 = vrot.slane %v811_v24, 2  ;;  %v310_v31 = vrot.slane %v811_v24, 3 }
  0x17   :  { %v506_v35 = vrot.slane %v817_v34, 1  ;;  %v513_v36 = vperm.slane %v817_v34, 0  ;;  %v311_v38 = vrot.slane %v811_v24, 4  ;;  %v312_v39 = vrot.slane %v811_v24, 5 }
  0x18   :  { %v317_v32 = vperm.slane %v309_v30, 0  ;;  %v318_v33 = vperm.slane %v310_v31, 0  ;;  %v313_v42 = vrot.slane %v811_v24, 6  ;;  %v508_v43 = vrot.slane %v817_v34, 3 }
  0x19   :  { %v514_v37 = vperm.slane %v506_v35, 0  ;;  %v319_v40 = vperm.slane %v311_v38, 0  ;;  %v320_v41 = vperm.slane %v312_v39, 0  ;;  %v509_v25 = vrot.slane %v817_v34, 4 }
  0x1a   :  { %v321_v44 = vperm.slane %v313_v42, 0  ;;  %v516_v45 = vperm.slane %v508_v43, 0  ;;  %v510_v31 = vrot.slane %v817_v34, 5  ;;  %v512_v35 = vrot.slane %v817_v34, 7 }
  0x1c   :  { %137 = vperm.xlu1 %704, %v119_v16   ;;  %v520_v38 = vperm.slane %v512_v35, 0 }
  0x1e   :  { %145 = vperm.xlu0 %703, %v121_v18   ;;  %141 = vperm.xlu2 %705, %v120_v19  }
  0x24   :  { %149 = vperm.xlu1 %704, %v122_v22  }
  0x26   :  { %153 = vperm.xlu2 %705, %v123_v23   ;;  %706 = vset.pattern.permute.xlu0 %v825_v47  ;;  %v314_v23 = vrot.slane %v811_v24, 7 }
  0x28   :  { %v322_v26 = vperm.slane %v314_v23, 0 }
  0x2c   :  { %324 = vperm.xlu1 %704, %v315_v27   ;;  %v517_v27 = vperm.slane %v509_v25, 0 }
  0x2e   :  { %328 = vperm.xlu2 %705, %v316_v29  }
  0x34   :  { %332 = vperm.xlu1 %704, %v317_v32   ;;  %v518_v32 = vperm.slane %v510_v31, 0 }
  0x36   :  { %336 = vperm.xlu2 %705, %v318_v33  }
  0x3c   :  { %522 = vperm.xlu1 %704, %v513_v36   ;;  %v507_v36 = vrot.slane %v817_v34, 2 }
  0x3e   :  { %526 = vperm.xlu2 %705, %v514_v37   ;;  %v515_v39 = vperm.slane %v507_v36, 0 }
  0x44   :  { %340 = vperm.xlu1 %704, %v319_v40  }
  0x46   :  { %344 = vperm.xlu2 %705, %v320_v41   ;;  %v511_v41 = vrot.slane %v817_v34, 6 }
  0x4c   :  { %348 = vperm.xlu1 %704, %v321_v44   ;;  %v519_v44 = vperm.slane %v511_v41, 0 }
  0x4e   :  { %534 = vperm.xlu2 %705, %v516_v45  }
  0x54   :  { %707 = vset.pattern.permute.xlu1 %v825_v47 }
  0x56   :  { %708 = vset.pattern.permute.xlu2 %v825_v47 }
  0x63   :  { %v437_v2 = vpop.permute.xlu2 %436 }
  0x64   :  { %vm438_vm5 = vcmp.lt.s32.totalorder %v830_v48, %v437_v2 }
  0x65   :  { %v440_v8 = vsel %vm438_vm5, %v439_v4, 4294967295 }
  0x66   :  { %v441_v10 = vperm.slane %v440_v8, 0  ;;  %v448_v11 = vperm.slane %v440_v8, 1  ;;  %v462_v15 = vperm.slane %v440_v8, 3  ;;  %v455_v17 = vperm.slane %v440_v8, 2 }
  0x67   :  { %v476_v19 = vperm.slane %v440_v8, 5  ;;  %v469_v20 = vperm.slane %v440_v8, 4  ;;  %v483_v24 = vperm.slane %v440_v8, 6  ;;  %v490_v40 = vperm.slane %v440_v8, 7 }
  0x70   :  { %v844_v9 = vpop.permute.xlu2 %129 }
  0x78   :  { %v848_v14 = vpop.permute.xlu2 %141 }
  0x7a   :  { %v41_v50 = vpop.permute.xlu0 %40 }
  0x7b   :  { %vm42_vm3 = vcmp.lt.s32.totalorder %v830_v48, %v41_v50  ;;  %v239_v56 = vpop.permute.xlu1 %238 }
  0x7c   :  { %v43_v51 = vsel %vm42_vm3, %v33_v49, 4294967295  ;;  %vm240_vm4 = vcmp.lt.s32.totalorder %v830_v48, %v239_v56 }
  0x7d   :  { %v65_v52 = vperm.slane %v43_v51, 3  ;;  %v51_v53 = vperm.slane %v43_v51, 1  ;;  %v44_v54 = vperm.slane %v43_v51, 0  ;;  %v72_v58 = vperm.slane %v43_v51, 4 }
  0x7e   :  { %v58_v59 = vperm.slane %v43_v51, 2  ;;  %v93_v60 = vperm.slane %v43_v51, 7  ;;  %v242_v61 = vsel %vm240_vm4, %v241_v57, 4294967295  ;;  %v86_v63 = vperm.slane %v43_v51, 6 }
  0x7f   :  { %70 = vperm.xlu2 %708, %v65_v52   ;;  %56 = vperm.xlu1 %707, %v51_v53   ;;  %v243_v62 = vperm.slane %v242_v61, 0  ;;  %v79_v1 = vperm.slane %v43_v51, 5  ;;  %v257_v5 = vperm.slane %v242_v61, 2  ;;  %v250_v6 = vperm.slane %v242_v61, 1 }
  0x80   :  { %49 = vperm.xlu0 %706, %v44_v54   ;;  %v264_v7 = vperm.slane %v242_v61, 3  ;;  %v271_v12 = vperm.slane %v242_v61, 4  ;;  %v285_v16 = vperm.slane %v242_v61, 6  ;;  %v278_v21 = vperm.slane %v242_v61, 5  ;;  %v850_v22 = vpop.permute.xlu2 %153 }
  0x81   :  { %v292_v28 = vperm.slane %v242_v61, 7 }
  0x86   :  { %v846_v13 = vpop.permute.xlu1 %125 }
  0x87   :  { %77 = vperm.xlu2 %708, %v72_v58   ;;  %63 = vperm.xlu1 %707, %v58_v59  }
  0x88   :  { %98 = vperm.xlu0 %706, %v93_v60   ;;  %v858_v30 = vpop.permute.xlu2 %328  ;;  %v134_v49 = vpop.permute.xlu0 %133 }
  0x8e   :  { %v138_v18 = vpop.permute.xlu1 %137 }
  0x8f   :  { %91 = vperm.xlu2 %708, %v86_v63   ;;  %84 = vperm.xlu1 %707, %v79_v1  }
  0x90   :  { %248 = vperm.xlu0 %706, %v243_v62   ;;  %v866_v37 = vpop.permute.xlu2 %336  ;;  %v880_v52 = vpop.permute.xlu0 %145 }
  0x96   :  { %v854_v29 = vpop.permute.xlu1 %149 }
  0x97   :  { %262 = vperm.xlu2 %708, %v257_v5   ;;  %255 = vperm.xlu1 %707, %v250_v6  }
  0x98   :  { %269 = vperm.xlu0 %706, %v264_v7   ;;  %v870_v43 = vpop.permute.xlu2 %526 }
  0x9e   :  { %v862_v33 = vpop.permute.xlu1 %324 }
  0x9f   :  { %446 = vperm.xlu2 %708, %v441_v10   ;;  %276 = vperm.xlu1 %707, %v271_v12  }
  0xa0   :  { %453 = vperm.xlu0 %706, %v448_v11   ;;  %v872_v46 = vpop.permute.xlu2 %344 }
  0xa6   :  { %v333_v42 = vpop.permute.xlu1 %332 }
  0xa7   :  { %467 = vperm.xlu2 %708, %v462_v15   ;;  %290 = vperm.xlu1 %707, %v285_v16  }
  0xa8   :  { %460 = vperm.xlu0 %706, %v455_v17   ;;  %v876_v50 = vpop.permute.xlu2 %534 }
  0xae   :  { %v523_v45 = vpop.permute.xlu1 %522 }
  0xaf   :  { %481 = vperm.xlu2 %708, %v476_v19   ;;  %474 = vperm.xlu1 %707, %v469_v20  }
  0xb0   :  { %283 = vperm.xlu0 %706, %v278_v21  }
  0xb7   :  { %710 = vset.pattern.permute.xlu2 %v774_v0  ;;  %709 = vset.pattern.permute.xlu1 %v774_v0 }
  0xb8   :  { %297 = vperm.xlu0 %706, %v292_v28   ;;  %352 = vperm.xlu2 %710, %v322_v26  }
  0xb9   :  { %538 = vperm.xlu1 %709, %v517_v27  }
  0xc0   :  { %488 = vperm.xlu0 %706, %v483_v24   ;;  %712 = vset.pattern.permute.xlu2 %v825_v47  ;;  %v874_v47 = vpop.permute.xlu1 %340 }
  0xc1   :  { %542 = vperm.xlu1 %709, %v518_v32  }
  0xc8   :  { %711 = vset.pattern.permute.xlu0 %v774_v0  ;;  %495 = vperm.xlu2 %712, %v490_v40   ;;  %v878_v51 = vpop.permute.xlu1 %348 }
  0xc9   :  { %550 = vperm.xlu1 %709, %v520_v38   ;;  %530 = vperm.xlu0 %711, %v515_v39  }
  0xd1   :  { %546 = vperm.xlu0 %711, %v519_v44  }
  0xd9   :  { %v71_v0 = vpop.permute.xlu2 %70 }
  0xda   :  { %vm103_vm6 = vcmp.eq.s32.totalorder %v71_v0, %v830_v48 }
  0xdb   :  { %v159_v60 = vsel %vm103_vm6, %v138_v18, 0.0 }
  0xdc   :  { %v186_v1 = vsel %vm164_vm8, %v159_v60, 0.0 }
  0xdd   :  { %v187_v4 = vrot.slane %v186_v1, 4 }
  0xdf   :  { %v188_v6 = vadd.f32 %v187_v4, %v186_v1 }
  0xe1   :  { %v78_v54 = vpop.permute.xlu2 %77  ;;  %v189_v17 = vrot.slane %v188_v6, 2 }
  0xe2   :  { %vm104_vm7 = vcmp.eq.s32.totalorder %v78_v54, %v830_v48 }
  0xe3   :  { %v160_v62 = vsel %vm104_vm7, %v848_v14, 0.0  ;;  %v190_v27 = vadd.f32 %v189_v17, %v188_v6 }
  0xe4   :  { %v193_v3 = vsel %vm164_vm8, %v160_v62, 0.0 }
  0xe5   :  { %v194_v5 = vrot.slane %v193_v3, 4  ;;  %v191_v41 = vrot.slane %v190_v27, 1 }
  0xe7   :  { %v195_v12 = vadd.f32 %v194_v5, %v193_v3 }
  0xe9   :  { %v92_v57 = vpop.permute.xlu2 %91  ;;  %v196_v21 = vrot.slane %v195_v12, 2 }
  0xea   :  { %vm106_vm9 = vcmp.eq.s32.totalorder %v92_v57, %v830_v48 }
  0xeb   :  { %v162_v10 = vsel %vm106_vm9, %v854_v29, 0.0  ;;  %v197_v35 = vadd.f32 %v196_v21, %v195_v12 }
  0xec   :  { %v207_v18 = vsel %vm164_vm8, %v162_v10, 0.0 }
  0xed   :  { %v208_v26 = vrot.slane %v207_v18, 4  ;;  %v198_v0 = vrot.slane %v197_v35, 1 }
  0xef   :  { %v209_v38 = vadd.f32 %v208_v26, %v207_v18  ;;  %v932_v3 = vadd.f32 %v198_v0, %v197_v35 }
  0xf1   :  { %v57_v53 = vpop.permute.xlu1 %56  ;;  %v263_v61 = vpop.permute.xlu2 %262 }
  0xf2   :  { %v50_v34 = vpop.permute.xlu0 %49  ;;  %vm301_vm10 = vcmp.eq.s32.totalorder %v263_v61, %v830_v48  ;;  %vm101_vm11 = vcmp.eq.s32.totalorder %v57_v53, %v830_v48 }
  0xf3   :  { %vm100_vm12 = vcmp.eq.s32.totalorder %v50_v34, %v830_v48  ;;  %v357_v14 = vsel %vm301_vm10, %v333_v42, 0.0  ;;  %v157_v15 = vsel %vm101_vm11, %v844_v9, 0.0  ;;  %v210_v34 = vrot.slane %v209_v38, 2 }
  0xf4   :  { %v156_v16 = vsel %vm100_vm12, %v846_v13, 0.0  ;;  %v377_v19 = vsel %vm164_vm8, %v357_v14, 0.0  ;;  %v172_v23 = vsel %vm164_vm8, %v157_v15, 0.0 }
  0xf5   :  { %v165_v25 = vsel %vm164_vm8, %v156_v16, 0.0  ;;  %v378_v28 = vrot.slane %v377_v19, 4  ;;  %v173_v31 = vrot.slane %v172_v23, 4 }
  0xf6   :  { %v166_v32 = vrot.slane %v165_v25, 4 }
  0xf7   :  { %v379_v42 = vadd.f32 %v378_v28, %v377_v19  ;;  %v174_v44 = vadd.f32 %v173_v31, %v172_v23 }
  0xf9   :  { %v64_v55 = vpop.permute.xlu1 %63  ;;  %v447_v7 = vpop.permute.xlu2 %446  ;;  %v175_v61 = vrot.slane %v174_v44, 2 }
  0xfa   :  { %v882_v56 = vpop.permute.xlu0 %98  ;;  %vm102_vm13 = vcmp.eq.s32.totalorder %v64_v55, %v830_v48  ;;  %vm497_vm14 = vcmp.eq.s32.totalorder %v447_v7, %v830_v48  ;;  %v380_v55 = vrot.slane %v379_v42, 2  ;;  %v939_v7 = vadd.f32 %v210_v34, %v209_v38 }
  0xfb   :  { %v158_v20 = vsel %vm102_vm13, %v134_v49, 0.0  ;;  %v553_v29 = vsel %vm497_vm14, %v523_v45, 0.0  ;;  %v167_v45 = vadd.f32 %v166_v32, %v165_v25  ;;  %vm107_vm1 = vcmp.eq.s32.totalorder %v882_v56, %v830_v48 }
  0xfc   :  { %v179_v9 = vsel %vm164_vm8, %v158_v20, 0.0  ;;  %v561_v39 = vsel %vm164_vm8, %v553_v29, 0.0  ;;  %v163_v56 = vsel %vm107_vm1, %v850_v22, 0.0  ;;  %v381_v10 = vadd.f32 %v380_v55, %v379_v42  ;;  %v630_v42 = vld [vmem:[#allocation2 + $0x28] sm:$0xff] }
  0xfd   :  { %v180_v40 = vrot.slane %v179_v9, 4  ;;  %v562_v53 = vrot.slane %v561_v39, 4  ;;  %v168_v62 = vrot.slane %v167_v45, 2  ;;  %v214_v22 = vsel %vm164_vm8, %v163_v56, 0.0  ;;  %665 = vmatpush.msra.mxu0 %v630_v42 }
  0xfe   :  { %v176_v12 = vadd.f32 %v175_v61, %v174_v44  ;;  %v215_v19 = vrot.slane %v214_v22, 4  ;;  %v212_v21 = vrot.slane %v939_v7, 1  ;;  %v382_v23 = vrot.slane %v381_v10, 1  ;;  %v628_v61 = vld [vmem:[#allocation2 + $0x18] sm:$0xff] }
  0xff   :  { %v181_v54 = vadd.f32 %v180_v40, %v179_v9  ;;  %v563_v4 = vadd.f32 %v562_v53, %v561_v39  ;;  %v944_v14 = vadd.f32 %v168_v62, %v167_v45  ;;  %vm641_vm1 = vcmask 1042434  }
 0x100   :  { %v177_v26 = vrot.slane %v176_v12, 1  ;;  %v383_v53 = vadd.f32 %v382_v23, %v381_v10  ;;  %v625_v23 = vld [vmem:[#allocation2] sm:$0xff] }
 0x101   :  { %v884_v58 = vpop.permute.xlu1 %84  ;;  %v468_v36 = vpop.permute.xlu2 %467  ;;  %v564_v16 = vrot.slane %v563_v4, 2 }
 0x102   :  { %v249_v59 = vpop.permute.xlu0 %248  ;;  %vm500_vm0 = vcmp.eq.s32.totalorder %v468_v36, %v830_v48  ;;  %vm105_vm4 = vcmp.eq.s32.totalorder %v884_v58, %v830_v48  ;;  %v216_v36 = vadd.f32 %v215_v19, %v214_v22  ;;  %v967_v34 = vadd.f32 %v177_v26, %v176_v12 }
 0x103   :  { %vm299_vm15 = vcmp.eq.s32.totalorder %v249_v59, %v830_v48  ;;  %v556_v57 = vsel %vm500_vm0, %v876_v50, 0.0  ;;  %v161_v58 = vsel %vm105_vm4, %v880_v52, 0.0  ;;  %v959_v9 = vadd.f32 %v564_v16, %v563_v4 }
 0x104   :  { %v355_v49 = vsel %vm299_vm15, %v862_v33, 0.0  ;;  %v929_v33 = vadd.f32 %v191_v41, %v190_v27  ;;  %v582_v5 = vsel %vm164_vm8, %v556_v57, 0.0  ;;  %v200_v52 = vsel %vm164_vm8, %v161_v58, 0.0  ;;  %v629_v57 = vld [vmem:[#allocation2 + $0x20] sm:$0xff] }
 0x105   :  { %v363_v59 = vsel %vm164_vm8, %v355_v49, 0.0  ;;  %v583_v17 = vrot.slane %v582_v5, 4  ;;  %v201_v38 = vrot.slane %v200_v52, 4  ;;  %666 = vmatpush.msra.mxu0 %v629_v57  ;;  %vm639_vm15 = vcmask 1041409  }
 0x106   :  { %vm647_vm4 = vcmask 1045509  }
 0x107   :  { %v584_v31 = vadd.f32 %v583_v17, %v582_v5  ;;  %v217_v5 = vrot.slane %v216_v36, 2  ;;  %667 = vmatpush.msra.mxu0 %v628_v61 }
 0x109   :  { %v889_v63 = vpop.permute.xlu1 %255  ;;  %v585_v55 = vrot.slane %v584_v31, 2 }
 0x10a   :  { %v892_v2 = vpop.permute.xlu0 %269  ;;  %vm300_vm2 = vcmp.eq.s32.totalorder %v889_v63, %v830_v48  ;;  %v182_v63 = vrot.slane %v181_v54, 2 }
 0x10b   :  { %vm302_vm3 = vcmp.eq.s32.totalorder %v892_v2, %v830_v48  ;;  %v356_v50 = vsel %vm300_vm2, %v858_v30, 0.0  ;;  %v364_v2 = vrot.slane %v363_v59, 4  ;;  %v947_v30 = vpop.permute.xlu2 %481  ;;  %v586_v22 = vadd.f32 %v585_v55, %v584_v31 }
 0x10c   :  { %v358_v6 = vsel %vm302_vm3, %v866_v37, 0.0  ;;  %v370_v15 = vsel %vm164_vm8, %v356_v50, 0.0  ;;  %v183_v18 = vadd.f32 %v182_v63, %v181_v54  ;;  %v566_v54 = vrot.slane %v959_v9, 1  ;;  %v627_v50 = vld [vmem:[#allocation2 + $0x10] sm:$0xff] }
 0x10d   :  { %v384_v37 = vsel %vm164_vm8, %v358_v6, 0.0  ;;  %v365_v20 = vadd.f32 %v364_v2, %v363_v59  ;;  %v371_v25 = vrot.slane %v370_v15, 4  ;;  %v202_v59 = vadd.f32 %v201_v38, %v200_v52  ;;  %668 = vmatpush.msra.mxu0 %v627_v50 }
 0x10e   :  { %v385_v27 = vrot.slane %v384_v37, 4  ;;  %v184_v35 = vrot.slane %v183_v18, 1  ;;  %vm502_vm12 = vcmp.eq.s32.totalorder %v947_v30, %v830_v48  ;;  %vm643_vm2 = vcmask 1043459  }
 0x10f   :  { %v366_v39 = vrot.slane %v365_v20, 2  ;;  %v372_v40 = vadd.f32 %v371_v25, %v370_v15  ;;  %vm645_vm3 = vcmask 1044484  }
 0x110   :  { %v386_v44 = vadd.f32 %v385_v27, %v384_v37  ;;  %v185_v63 = vadd.f32 %v184_v35, %v183_v18  ;;  %v203_v18 = vrot.slane %v202_v59, 2 }
 0x111   :  { %v899_v8 = vpop.permute.xlu1 %276  ;;  %v367_v62 = vadd.f32 %v366_v39, %v365_v20  ;;  %v373_v56 = vrot.slane %v372_v40, 2 }
 0x112   :  { %v902_v11 = vpop.permute.xlu0 %453  ;;  %vm303_vm6 = vcmp.eq.s32.totalorder %v899_v8, %v830_v48  ;;  %v170_v8 = vrot.slane %v944_v14, 1  ;;  %v387_v2 = vrot.slane %v386_v44, 2 }
 0x113   :  { %vm498_vm5 = vcmp.eq.s32.totalorder %v902_v11, %v830_v48  ;;  %v359_v28 = vsel %vm303_vm6, %v874_v47, 0.0  ;;  %v353_v49 = vpop.permute.xlu2 %352  ;;  %v368_v19 = vrot.slane %v367_v62, 1  ;;  %v374_v20 = vadd.f32 %v373_v56, %v372_v40 }
 0x114   :  { %v554_v11 = vsel %vm498_vm5, %v870_v43, 0.0  ;;  %v391_v41 = vsel %vm164_vm8, %v359_v28, 0.0  ;;  %v388_v52 = vadd.f32 %v387_v2, %v386_v44  ;;  %v171_v27 = vadd.f32 %v170_v8, %v944_v14 }
 0x115   :  { %v568_v43 = vsel %vm164_vm8, %v554_v11, 0.0  ;;  %v990_v28 = vadd.f32 %v566_v54, %v959_v9  ;;  %v587_v40 = vrot.slane %v586_v22, 1  ;;  %v369_v44 = vadd.f32 %v368_v19, %v367_v62 }
 0x116   :  { %v569_v45 = vrot.slane %v568_v43, 4  ;;  %v389_v14 = vrot.slane %v388_v52, 1  ;;  %vm649_vm5 = vcmask 1046534   ;;  %vm651_vm6 = vcmask 1047559  }
 0x117   :  { %v588_v50 = vadd.f32 %v587_v40, %v586_v22 }
 0x118   :  { %v570_v6 = vadd.f32 %v569_v45, %v568_v43  ;;  %v992_v43 = vadd.f32 %v383_v53, %v185_v63  ;;  %v375_v45 = vrot.slane %v374_v20, 1  ;;  %v390_v2 = vadd.f32 %v389_v14, %v388_v52 }
 0x119   :  { %v913_v13 = vpop.permute.xlu1 %290 }
 0x11a   :  { %v915_v24 = vpop.permute.xlu0 %460  ;;  %vm305_vm10 = vcmp.eq.s32.totalorder %v913_v13, %v830_v48  ;;  %v571_v30 = vrot.slane %v570_v6, 2  ;;  %v376_v62 = vadd.f32 %v375_v45, %v374_v20  ;;  %v422_v52 = vadd.f32 %v390_v2, %v929_v33 }
 0x11b   :  { %vm499_vm13 = vcmp.eq.s32.totalorder %v915_v24, %v830_v48 }
 0x11c   :  { %v572_v8 = vadd.f32 %v571_v30, %v570_v6 }
 0x11e   :  { %v573_v56 = vrot.slane %v572_v8, 1 }
 0x121   :  { %v475_v60 = vpop.permute.xlu1 %474 }
 0x122   :  { %v284_v1 = vpop.permute.xlu0 %283  ;;  %vm501_vm9 = vcmp.eq.s32.totalorder %v475_v60, %v830_v48  ;;  %v392_v60 = vrot.slane %v391_v41, 4  ;;  %v496_v38 = vpop.permute.xlu2 %495 }
 0x123   :  { %vm304_vm7 = vcmp.eq.s32.totalorder %v284_v1, %v830_v48  ;;  %v361_v1 = vsel %vm305_vm10, %v878_v51, 0.0  ;;  %v626_v51 = vld [vmem:[#allocation2 + $0x8] sm:$0xff]  ;;  %vm504_vm14 = vcmp.eq.s32.totalorder %v496_v38, %v830_v48 }
 0x124   :  { %v360_v47 = vsel %vm304_vm7, %v872_v46, 0.0  ;;  %v393_v15 = vadd.f32 %v392_v60, %v391_v41  ;;  %v405_v16 = vsel %vm164_vm8, %v361_v1, 0.0  ;;  %669 = vmatpush.msra.mxu0 %v626_v51  ;;  %v204_v41 = vadd.f32 %v203_v18, %v202_v59 }
 0x125   :  { %v398_v46 = vsel %vm164_vm8, %v360_v47, 0.0  ;;  %v574_v18 = vadd.f32 %v573_v56, %v572_v8 }
 0x126   :  { %v399_v12 = vrot.slane %v398_v46, 4  ;;  %v394_v35 = vrot.slane %v393_v15, 2  ;;  %670 = vmatpush.msra.mxu0 %v625_v23 }
 0x128   :  { %v400_v31 = vadd.f32 %v399_v12, %v398_v46  ;;  %v395_v53 = vadd.f32 %v394_v35, %v393_v15 }
 0x12a   :  { %v298_v29 = vpop.permute.xlu0 %297  ;;  %v396_v51 = vrot.slane %v395_v53, 1 }
 0x12b   :  { %v539_v32 = vpop.permute.xlu1 %538  ;;  %vm306_vm11 = vcmp.eq.s32.totalorder %v298_v29, %v830_v48  ;;  %v406_v29 = vrot.slane %v405_v16, 4 }
 0x12c   :  { %v557_v0 = vsel %vm501_vm9, %v539_v32, 0.0  ;;  %v362_v58 = vsel %vm306_vm11, %v353_v49, 0.0  ;;  %v994_v32 = vadd.f32 %v217_v5, %v216_v36  ;;  %v401_v49 = vrot.slane %v400_v31, 2 }
 0x12d   :  { %v589_v4 = vsel %vm164_vm8, %v557_v0, 0.0  ;;  %v412_v25 = vsel %vm164_vm8, %v362_v58, 0.0  ;;  %v407_v9 = vadd.f32 %v406_v29, %v405_v16  ;;  %v397_v29 = vadd.f32 %v396_v51, %v395_v53 }
 0x12e   :  { %v590_v17 = vrot.slane %v589_v4, 4  ;;  %v413_v47 = vrot.slane %v412_v25, 4  ;;  %v219_v24 = vrot.slane %v994_v32, 1  ;;  %v402_v5 = vadd.f32 %v401_v49, %v400_v31 }
 0x12f   :  { %v408_v63 = vrot.slane %v407_v9, 2  ;;  %v423_v8 = vadd.f32 %v397_v29, %v932_v3 }
 0x130   :  { %v591_v39 = vadd.f32 %v590_v17, %v589_v4  ;;  %v414_v59 = vadd.f32 %v413_v47, %v412_v25  ;;  %v419_v17 = vadd.f32 %v369_v44, %v171_v27  ;;  %v620_v44 = vadd.f32 %v588_v50, %v422_v52 }
 0x131   :  { %v409_v20 = vadd.f32 %v408_v63, %v407_v9 }
 0x132   :  { %v977_v10 = vpop.permute.xlu0 %488  ;;  %v592_v54 = vrot.slane %v591_v39, 2  ;;  %v415_v15 = vrot.slane %v414_v59, 2  ;;  %v617_v47 = vadd.f32 %v990_v28, %v419_v17 }
 0x133   :  { %v543_v13 = vpop.permute.xlu1 %542  ;;  %vm503_vm0 = vcmp.eq.s32.totalorder %v977_v10, %v830_v48 }
 0x134   :  { %v558_v37 = vsel %vm502_vm12, %v543_v13, 0.0  ;;  %v593_v6 = vadd.f32 %v592_v54, %v591_v39  ;;  %v205_v13 = vrot.slane %v204_v41, 1  ;;  %v416_v31 = vadd.f32 %v415_v15, %v414_v59 }
 0x135   :  { %v596_v11 = vsel %vm164_vm8, %v558_v37, 0.0  ;;  %v420_v37 = vadd.f32 %v376_v62, %v967_v34 }
 0x136   :  { %v597_v26 = vrot.slane %v596_v11, 4  ;;  %v594_v30 = vrot.slane %v593_v6, 1  ;;  %v206_v34 = vadd.f32 %v205_v13, %v204_v41  ;;  %v417_v9 = vrot.slane %v416_v31, 1 }
 0x137   :  { %v618_v38 = vadd.f32 %v574_v18, %v420_v37 }
 0x138   :  { %v598_v42 = vadd.f32 %v597_v26, %v596_v11  ;;  %v403_v11 = vrot.slane %v402_v5, 1  ;;  %v595_v45 = vadd.f32 %v594_v30, %v593_v6 }
 0x13a   :  { %v599_v60 = vrot.slane %v598_v42, 2  ;;  %v404_v48 = vadd.f32 %v403_v11, %v402_v5 }
 0x13b   :  { %v551_v36 = vpop.permute.xlu1 %550  ;;  %v531_v0 = vpop.permute.xlu0 %530 }
 0x13c   :  { %v560_v55 = vsel %vm504_vm14, %v551_v36, 0.0  ;;  %v555_v57 = vsel %vm499_vm13, %v531_v0, 0.0  ;;  %v600_v16 = vadd.f32 %v599_v60, %v598_v42  ;;  %v410_v42 = vrot.slane %v409_v20, 1 }
 0x13d   :  { %v610_v46 = vsel %vm164_vm8, %v560_v55, 0.0  ;;  %v575_v61 = vsel %vm164_vm8, %v555_v57, 0.0  ;;  %v640_v36 = vsel %vm639_vm15, %v618_v38, %v617_v47  ;;  %v424_v28 = vadd.f32 %v404_v48, %v206_v34 }
 0x13e   :  { %v611_v1 = vrot.slane %v610_v46, 4  ;;  %v576_v4 = vrot.slane %v575_v61, 4  ;;  %v601_v35 = vrot.slane %v600_v16, 1  ;;  %v411_v53 = vadd.f32 %v410_v42, %v409_v20 }
 0x13f   :  { %v621_v55 = vadd.f32 %v595_v45, %v423_v8  ;;  %v418_v60 = vadd.f32 %v417_v9, %v416_v31 }
 0x140   :  { %v612_v12 = vadd.f32 %v611_v1, %v610_v46  ;;  %v577_v58 = vadd.f32 %v576_v4, %v575_v61  ;;  %v602_v49 = vadd.f32 %v601_v35, %v600_v16  ;;  %v213_v61 = vadd.f32 %v212_v21, %v939_v7 }
 0x142   :  { %v578_v19 = vrot.slane %v577_v58, 2  ;;  %v613_v22 = vrot.slane %v612_v12, 2  ;;  %v622_v46 = vadd.f32 %v602_v49, %v424_v28  ;;  %v425_v50 = vadd.f32 %v411_v53, %v213_v61 }
 0x143   :  { %v547_v23 = vpop.permute.xlu0 %546 }
 0x144   :  { %v579_v25 = vadd.f32 %v578_v19, %v577_v58  ;;  %v559_v26 = vsel %vm503_vm0, %v547_v23, 0.0  ;;  %v614_v10 = vadd.f32 %v613_v22, %v612_v12 }
 0x145   :  { %v603_v27 = vsel %vm164_vm8, %v559_v26, 0.0 }
 0x146   :  { %v580_v39 = vrot.slane %v579_v25, 1  ;;  %v604_v40 = vrot.slane %v603_v27, 4  ;;  %v615_v54 = vrot.slane %v614_v10, 1 }
 0x148   :  { %v581_v33 = vadd.f32 %v580_v39, %v579_v25  ;;  %v605_v14 = vadd.f32 %v604_v40, %v603_v27  ;;  %v616_v1 = vadd.f32 %v615_v54, %v614_v10 }
 0x14a   :  { %v619_v41 = vadd.f32 %v581_v33, %v992_v43  ;;  %v606_v0 = vrot.slane %v605_v14, 2  ;;  %v220_v43 = vadd.f32 %v219_v24, %v994_v32 }
 0x14c   :  { %v607_v57 = vadd.f32 %v606_v0, %v605_v14  ;;  %v642_v59 = vsel %vm641_vm1, %v619_v41, %v640_v36  ;;  %v426_v5 = vadd.f32 %v418_v60, %v220_v43 }
 0x14d   :  { %v644_v3 = vsel %vm643_vm2, %v620_v44, %v642_v59 }
 0x14e   :  { %v608_v62 = vrot.slane %v607_v57, 1  ;;  %v646_v56 = vsel %vm645_vm3, %v621_v55, %v644_v3  ;;  %v624_v6 = vadd.f32 %v616_v1, %v426_v5 }
 0x14f   :  { %v648_v4 = vsel %vm647_vm4, %v622_v46, %v646_v56 }
 0x150   :  { %v609_v63 = vadd.f32 %v608_v62, %v607_v57 }
 0x152   :  { %v623_v2 = vadd.f32 %v609_v63, %v425_v50 }
 0x154   :  { %v650_v12 = vsel %vm649_vm5, %v623_v2, %v648_v4 }
 0x155   :  { %v652_v58 = vsel %vm651_vm6, %v624_v6, %v650_v12 }
 0x156   :  { %697 = vmatmul.msk.f32.vlgmr.msra.gmra.mxu0 %vm164_vm8, %v652_v58 }
 0x1d3   :  { %v672_v7 = vpop.f32.mrf.mxu0 }
 0x1d4   :  { %675 = vst [vmem:[#allocation5] sm:$0xff] %v672_v7 }
 0x1d5   :  { %686 = dma.vmem_to_hbm [thread:$0]  %s682_s29, 128, %s684_s5, [#allocation4]  }
 0x1d6   :  { %769 = dma.done.wait [#allocation4], 128  }
 0x1d7   :  { %770 = vsyncadd [#allocation4], 4294967168 }
 0x1d8   :  { %691 = vsyncpa [#allocation3], 1 }
 0x1d9   :  { %692 = vsyncpa [#allocation4], 1 }

</bundles_post_ra>
